<compile_context>
chip_gen: v6e
topology: v6e:2x2x1
jax: 0.10.0
libtpu: 0.0.40
codegen_flags: <defaults>
</compile_context>

<pallas_src>
import jax
import jax.numpy as jnp
from jax.experimental import pallas as pl
from jax.experimental.pallas import tpu as pltpu

HIDDEN = 64


def critic_kernel(x_ref, w1_ref, b1_ref, w2_ref, b2_ref, w3_ref, b3_ref, o_ref):
    # x_ref : (TBp, P*obs_dim)   P batch rows lane-packed per sublane row
    # w1_ref: (P*obs_dim, P*H)   block-diagonal    b1_ref: (1, P*H)  f32
    # w2_ref: (P*H, P*H)         block-diagonal    b2_ref: (1, P*H)  f32
    # w3_ref: (P*H, P)           block-diagonal    b3_ref: (1, 1)    f32
    # o_ref : (TBp, P)           one critic value per packed batch row
    h1 = jnp.tanh(
        jnp.dot(x_ref[...], w1_ref[...], preferred_element_type=jnp.float32)
        + b1_ref[...]
    )
    h2 = jnp.tanh(
        jnp.dot(h1.astype(w2_ref.dtype), w2_ref[...],
                preferred_element_type=jnp.float32)
        + b2_ref[...]
    )
    v = (
        jnp.dot(h2.astype(w3_ref.dtype), w3_ref[...],
                preferred_element_type=jnp.float32)
        + b3_ref[...]
    )
    o_ref[...] = v.astype(o_ref.dtype)


def _default_pack():
    # P*64 should match the MXU width: 256-wide (v4/v5p/v6e/v7x) -> P=4,
    # 128-wide (v2/v3/v5e) -> P=2.  Safe fallback: 4.
    try:
        kind = jax.devices()[0].device_kind.lower()
        if any(s in kind for s in ("v2", "v3", "v5 lite", "v5e", "v5litepod")):
            return 2
    except Exception:
        pass
    return 4


def critic_forward(x, params, *, block_rows=2048, pack=None, compute_dtype=None):
    """x: [B, obs_dim] float32 -> [B] float32  (== Critic.forward(x))."""
    w1, b1, w2, b2, w3, b3 = params
    B, obs_dim = x.shape
    H = w1.shape[1]

    # ----- P-way lane packing (block-diagonal weights built once, in-wrapper) ----
    P = max(1, int(pack if pack is not None else _default_pack()))
    while B % P != 0:          # pick the largest P (<= requested) that divides B:
        P = max(1, P // 2)     # avoids any jnp.pad HBM copy of x.

    Bp, Dp, Hp = B // P, P * obs_dim, P * H

    xp = x.reshape(Bp, Dp)                         # free row-major view
    eye_p = jnp.eye(P, dtype=w1.dtype)
    w1p = jnp.kron(eye_p, w1)                      # (Dp, Hp)
    w2p = jnp.kron(eye_p, w2)                      # (Hp, Hp)
    w3p = jnp.kron(eye_p, w3.reshape(H, 1))        # (Hp, P)
    b1p = jnp.tile(b1.reshape(1, H), (1, P)).astype(jnp.float32)
    b2p = jnp.tile(b2.reshape(1, H), (1, P)).astype(jnp.float32)
    b3p = b3.reshape(1, 1).astype(jnp.float32)

    if compute_dtype is not None:
        # bf16 inputs halve x HBM traffic; f32 accumulation keeps accuracy.
        xp = xp.astype(compute_dtype)
        w1p = w1p.astype(compute_dtype)
        w2p = w2p.astype(compute_dtype)
        w3p = w3p.astype(compute_dtype)

    # ----- batch tiling -----------------------------------------------------
    itemsize = jnp.dtype(xp.dtype).itemsize
    tbp = max(8, block_rows // P)                              # packed rows / step
    tbp = min(tbp, max(8, (4 * 1024 * 1024) // (Dp * itemsize)))  # <=4 MiB x tile
    if Bp <= tbp:
        tbp = Bp                       # single step, full-dim block (always legal)
    else:
        tbp = max(8, (tbp // 8) * 8)   # sublane-aligned; ragged tail is masked
    grid_n = pl.cdiv(Bp, tbp)

    flops = 2 * Bp * (Dp * Hp + Hp * Hp + Hp * P)
    bytes_accessed = (
        itemsize * (Bp * Dp + Dp * Hp + Hp * Hp + Hp * P)
        + 4 * (Bp * P + 2 * Hp + 1)
    )
    cost = pl.CostEstimate(flops=flops, transcendentals=2 * B * H,
                           bytes_accessed=bytes_accessed)

    resident = lambda i: (0, 0)   # weights/biases: same block every step (DMA'd once)

    out = pl.pallas_call(
        critic_kernel,
        out_shape=jax.ShapeDtypeStruct((Bp, P), jnp.float32),
        grid=(grid_n,),
        in_specs=[
            pl.BlockSpec((tbp, Dp), lambda i: (i, 0)),   # x: per-step batch tile
            pl.BlockSpec((Dp, Hp), resident),            # W1'
            pl.BlockSpec((1, Hp), resident),             # b1'
            pl.BlockSpec((Hp, Hp), resident),            # W2'
            pl.BlockSpec((1, Hp), resident),             # b2'
            pl.BlockSpec((Hp, P), resident),             # W3'
            pl.BlockSpec((1, 1), resident),              # b3
        ],
        out_specs=pl.BlockSpec((tbp, P), lambda i: (i, 0)),
        compiler_params=pltpu.CompilerParams(
            # independent batch tiles: shards grid steps across v7x's two TCs
            dimension_semantics=("parallel",),
            # explicit limit (v5e scoped default is only 16 MiB)
            vmem_limit_bytes=32 * 1024 * 1024,
        ),
        cost_estimate=cost,
    )(xp, w1p, b1p, w2p, b2p, w3p, b3p)

    # (Bp, P) row-major == original batch order; also performs the .squeeze(-1).
    return out.reshape(B)


def init_critic_params(key, obs_dim, hidden=HIDDEN):
    """Deterministic synthetic init (PyTorch-Linear-like uniform ranges)."""
    ks = jax.random.split(key, 6)

    def lin(kw, kb, fan_in, fan_out):
        bound = 1.0 / jnp.sqrt(fan_in)
        w = jax.random.uniform(kw, (fan_in, fan_out), jnp.float32, -bound, bound)
        b = jax.random.uniform(kb, (1, fan_out), jnp.float32, -bound, bound)
        return w, b

    w1, b1 = lin(ks[0], ks[1], obs_dim, hidden)
    w2, b2 = lin(ks[2], ks[3], hidden, hidden)
    w3, b3 = lin(ks[4], ks[5], hidden, 1)
    return (w1, b1, w2, b2, w3, b3)


if __name__ == "__main__":
    key = jax.random.PRNGKey(0)
    k_x, k_x2, k_p = jax.random.split(key, 3)

    B, OBS_DIM = 8, 16
    x = jax.random.normal(k_x, (B, OBS_DIM), dtype=jnp.float32)
    params = init_critic_params(k_p, OBS_DIM)
    w1, b1, w2, b2, w3, b3 = params

    def reference(xx):
        return (jnp.tanh(jnp.tanh(xx @ w1 + b1) @ w2 + b2) @ w3 + b3)[:, 0]

    # 1) small batch, single full-dim tile, pure f32 (exact module semantics)
    y = critic_forward(x, params)
    jax.block_until_ready(y)
    assert y.shape == (B,)
    assert jnp.allclose(y, reference(x), atol=2e-5, rtol=2e-5)

    # 2) multi-tile path with a ragged last tile (no jnp.pad copy of x)
    B2 = 200
    x2 = jax.random.normal(k_x2, (B2, OBS_DIM), dtype=jnp.float32)
    y2 = critic_forward(x2, params, block_rows=64)
    jax.block_until_ready(y2)
    assert y2.shape == (B2,)
    assert jnp.allclose(y2, reference(x2), atol=2e-5, rtol=2e-5)

    # 3) bf16 inputs/weights with f32 accumulation (optional fast path)
    y_bf16 = critic_forward(x, params, compute_dtype=jnp.bfloat16)
    jax.block_until_ready(y_bf16)
    assert jnp.allclose(y_bf16, reference(x), atol=0.1, rtol=0.1)

    print("KERNEL_OK")
</pallas_src>

<mosaic_0001>
module attributes {stable_mosaic.version = 11 : i64} {
  func.func @critic_kernel(%arg0: i32, %arg1: memref<2x64xf32, #tpu.memory_space<vmem>>, %arg2: memref<64x256xf32, #tpu.memory_space<vmem>>, %arg3: memref<1x256xf32, #tpu.memory_space<vmem>>, %arg4: memref<256x256xf32, #tpu.memory_space<vmem>>, %arg5: memref<1x256xf32, #tpu.memory_space<vmem>>, %arg6: memref<256x4xf32, #tpu.memory_space<vmem>>, %arg7: memref<1x1xf32, #tpu.memory_space<vmem>>, %arg8: memref<2x4xf32, #tpu.memory_space<vmem>>) attributes {dimension_semantics = [#tpu.dimension_semantics<parallel>], iteration_bounds = array<i64: 1>, scalar_prefetch = 0 : i64, scratch_operands = 0 : i64, tpu.core_type = #tpu.core_type<tc>, window_params = [{transform_indices = @transform_0, window_bounds = array<i64: 2, 64>}, {pipeline_mode = #tpu.pipeline_mode<synchronous>, transform_indices = @transform_1, window_bounds = array<i64: 64, 256>}, {pipeline_mode = #tpu.pipeline_mode<synchronous>, transform_indices = @transform_2, window_bounds = array<i64: 1, 256>}, {pipeline_mode = #tpu.pipeline_mode<synchronous>, transform_indices = @transform_3, window_bounds = array<i64: 256, 256>}, {pipeline_mode = #tpu.pipeline_mode<synchronous>, transform_indices = @transform_4, window_bounds = array<i64: 1, 256>}, {pipeline_mode = #tpu.pipeline_mode<synchronous>, transform_indices = @transform_5, window_bounds = array<i64: 256, 4>}, {pipeline_mode = #tpu.pipeline_mode<synchronous>, transform_indices = @transform_6, window_bounds = array<i64: 1, 1>}, {transform_indices = @transform_7, window_bounds = array<i64: 2, 4>}]} {
    %c0 = arith.constant 0 : index
    %c0_0 = arith.constant 0 : index
    %0 = vector.load %arg1[%c0, %c0_0] : memref<2x64xf32, #tpu.memory_space<vmem>>, vector<2x64xf32>
    %c0_1 = arith.constant 0 : index
    %c0_2 = arith.constant 0 : index
    %1 = vector.load %arg2[%c0_1, %c0_2] : memref<64x256xf32, #tpu.memory_space<vmem>>, vector<64x256xf32>
    %cst = arith.constant dense<0.000000e+00> : vector<2x256xf32>
    %2 = tpu.matmul %0, %1, %cst {dimension_numbers = #tpu.dot_dimension_numbers<[1], [0], [0], [1], [0, 0, 1, 1], [], []>} : vector<2x64xf32>, vector<64x256xf32>, vector<2x256xf32> -> vector<2x256xf32>
    %c0_3 = arith.constant 0 : index
    %c0_4 = arith.constant 0 : index
    %3 = vector.load %arg3[%c0_3, %c0_4] : memref<1x256xf32, #tpu.memory_space<vmem>>, vector<1x256xf32>
    %4 = vector.broadcast %3 : vector<1x256xf32> to vector<2x256xf32>
    %5 = arith.addf %2, %4 : vector<2x256xf32>
    %6 = math.tanh %5 : vector<2x256xf32>
    %c0_5 = arith.constant 0 : index
    %c0_6 = arith.constant 0 : index
    %7 = vector.load %arg4[%c0_5, %c0_6] : memref<256x256xf32, #tpu.memory_space<vmem>>, vector<256x256xf32>
    %cst_7 = arith.constant dense<0.000000e+00> : vector<2x256xf32>
    %8 = tpu.matmul %6, %7, %cst_7 {dimension_numbers = #tpu.dot_dimension_numbers<[1], [0], [0], [1], [0, 0, 1, 1], [], []>} : vector<2x256xf32>, vector<256x256xf32>, vector<2x256xf32> -> vector<2x256xf32>
    %c0_8 = arith.constant 0 : index
    %c0_9 = arith.constant 0 : index
    %9 = vector.load %arg5[%c0_8, %c0_9] : memref<1x256xf32, #tpu.memory_space<vmem>>, vector<1x256xf32>
    %10 = vector.broadcast %9 : vector<1x256xf32> to vector<2x256xf32>
    %11 = arith.addf %8, %10 : vector<2x256xf32>
    %12 = math.tanh %11 : vector<2x256xf32>
    %c0_10 = arith.constant 0 : index
    %c0_11 = arith.constant 0 : index
    %13 = vector.load %arg6[%c0_10, %c0_11] : memref<256x4xf32, #tpu.memory_space<vmem>>, vector<256x4xf32>
    %cst_12 = arith.constant dense<0.000000e+00> : vector<2x4xf32>
    %14 = tpu.matmul %12, %13, %cst_12 {dimension_numbers = #tpu.dot_dimension_numbers<[1], [0], [0], [1], [0, 0, 1, 1], [], []>} : vector<2x256xf32>, vector<256x4xf32>, vector<2x4xf32> -> vector<2x4xf32>
    %c0_13 = arith.constant 0 : index
    %c0_14 = arith.constant 0 : index
    %15 = vector.load %arg7[%c0_13, %c0_14] : memref<1x1xf32, #tpu.memory_space<vmem>>, vector<1x1xf32>
    %16 = vector.broadcast %15 : vector<1x1xf32> to vector<2x4xf32>
    %17 = arith.addf %14, %16 : vector<2x4xf32>
    %c0_15 = arith.constant 0 : index
    %c0_16 = arith.constant 0 : index
    %18 = vector.load %arg8[%c0_15, %c0_16] : memref<2x4xf32, #tpu.memory_space<vmem>>, vector<2x4xf32>
    tpu.vector_store %arg8[%c0_15, %c0_16], %17 {strides = array<i32>} : memref<2x4xf32, #tpu.memory_space<vmem>>, vector<2x4xf32>,
    return
  }
  func.func @transform_0(%arg0: i32) -> (i32, i32) {
    %c0_i32 = arith.constant 0 : i32
    %c0_i32_0 = arith.constant 0 : i32
    return %arg0, %c0_i32 : i32, i32
  }
  func.func @transform_1(%arg0: i32) -> (i32, i32) {
    %c0_i32 = arith.constant 0 : i32
    %c0_i32_0 = arith.constant 0 : i32
    %c0_i32_1 = arith.constant 0 : i32
    return %c0_i32, %c0_i32_0 : i32, i32
  }
  func.func @transform_2(%arg0: i32) -> (i32, i32) {
    %c0_i32 = arith.constant 0 : i32
    %c0_i32_0 = arith.constant 0 : i32
    %c0_i32_1 = arith.constant 0 : i32
    return %c0_i32, %c0_i32_0 : i32, i32
  }
  func.func @transform_3(%arg0: i32) -> (i32, i32) {
    %c0_i32 = arith.constant 0 : i32
    %c0_i32_0 = arith.constant 0 : i32
    %c0_i32_1 = arith.constant 0 : i32
    return %c0_i32, %c0_i32_0 : i32, i32
  }
  func.func @transform_4(%arg0: i32) -> (i32, i32) {
    %c0_i32 = arith.constant 0 : i32
    %c0_i32_0 = arith.constant 0 : i32
    %c0_i32_1 = arith.constant 0 : i32
    return %c0_i32, %c0_i32_0 : i32, i32
  }
  func.func @transform_5(%arg0: i32) -> (i32, i32) {
    %c0_i32 = arith.constant 0 : i32
    %c0_i32_0 = arith.constant 0 : i32
    %c0_i32_1 = arith.constant 0 : i32
    return %c0_i32, %c0_i32_0 : i32, i32
  }
  func.func @transform_6(%arg0: i32) -> (i32, i32) {
    %c0_i32 = arith.constant 0 : i32
    %c0_i32_0 = arith.constant 0 : i32
    %c0_i32_1 = arith.constant 0 : i32
    return %c0_i32, %c0_i32_0 : i32, i32
  }
  func.func @transform_7(%arg0: i32) -> (i32, i32) {
    %c0_i32 = arith.constant 0 : i32
    %c0_i32_0 = arith.constant 0 : i32
    return %arg0, %c0_i32 : i32, i32
  }
}

</mosaic_0001>

<bundles_post_ra>
// kernel: tpu_custom_call.1
= control target key start
LH: loop header
LB: loop body
LE: loop exit
PB: predicated region body
PF: predicated region fallthrough
CT: control target
= control target key end

     0   :  { %s735_s0 = inlined_call_operand.vmem [shape: f32[2,64], index: 0, kind: input, shape index: {}]   ;;  %s736_s1 = inlined_call_operand.vmem [shape: f32[64,256], index: 1, kind: input, shape index: {}]   ;;  %s737_s2 = inlined_call_operand.vmem [shape: f32[1,256], index: 2, kind: input, shape index: {}]   ;;  %s738_s3 = inlined_call_operand.hbm [shape: f32[256,256], index: 3, kind: input, shape index: {}]   ;;  %s739_s4 = inlined_call_operand.vmem [shape: f32[1,256], index: 4, kind: input, shape index: {}]   ;;  %s740_s5 = inlined_call_operand.vmem [shape: f32[256,4], index: 5, kind: input, shape index: {}]   ;;  %s741_s6 = inlined_call_operand.<no memory space> [shape: f32[1,1], index: 6, kind: input, shape index: {}]   ;;  %s742_s7 = inlined_call_operand.hbm [shape: f32[2,4], index: 7, kind: output, shape index: {}]  }
   0x1   :  { %v12_v0 = vstv %s741_s6 }
   0x2   :  { %13 = vst [vmem:[#allocation2] sm:$0x1] %v12_v0 }
   0x3   :  { %14 = vsyncpa [#allocation4], 0 }
   0x4   :  { %15 = vsyncpa [#allocation5], 0  ;;  %s523_s26 = smov [#allocation3]  }
   0x5   :  { %s27_s27 = sshll.u32 %s523_s26, 4  ;;  %s28_s27 = int_to_ptr.vmem [resolvable:$true] %s27_s27 }
   0x6   :  { %s487_s28 = scalar_lea.vmem %s28_s27, 8192  ;;  %p492_p1 = scmp.lt.s32.totalorder %s28_s27, %s28_s27 }
   0x7   :  { %p488_p0 = scmp.ne.s32.totalorder %s28_s27, %s487_s28  ;;  %p493_p2 = scmp.lt.s32.totalorder %s487_s28, %s487_s28 }
   0x9   :  { %p494_p3 = por %p493_p2, %p492_p1 }
   0xb   :  { %p495_p4 = pnand %p494_p3, %p488_p0 }
   0xd   :  { %498 = shalt.err (!%p495_p4)
}
   0xe   :  { %s524_s29 = smov 256   ;;  %s525_s30 = smov 16  }
   0xf   :  { %33 = dma.hbm_to_vmem [thread:$0]  %s738_s3, 8192, %s28_s27, [#allocation4], %s524_s29, %s524_s29, %s525_s30  }
  0x10   :  { %519 = dma.done.wait [#allocation4], 8192  }
  0x11   :  { %520 = vsyncadd [#allocation4], 4294959104  ;;  %v526_v1 = vmov 0.0   ;;  %v59_v2 = vld [vmem:[%s736_s1 + $0x78] sm:$0xff]  ;;  %v58_v3 = vld [vmem:[%s736_s1 + $0x70] sm:$0xff]  ;;  %vm72_vm0 = vcmask 523264  }
  0x12   :  { %140 = vmatprep.mubr.f32.mxu0 %v526_v1  ;;  %v57_v4 = vld [vmem:[%s736_s1 + $0x68] sm:$0xff]  ;;  %92 = vmatprep.subr.mxu0 %v59_v2  ;;  %v56_v5 = vld [vmem:[%s736_s1 + $0x60] sm:$0xff]  ;;  %v55_v6 = vld [vmem:[%s736_s1 + $0x58] sm:$0xff]  ;;  %vm410_vm1 = vcmask 25600  }
  0x13   :  { %93 = vmatpush1.msra.mxu0 %v58_v3  ;;  %v54_v7 = vld [vmem:[%s736_s1 + $0x50] sm:$0xff]  ;;  %v53_v8 = vld [vmem:[%s736_s1 + $0x48] sm:$0xff]  ;;  %v52_v9 = vld [vmem:[%s736_s1 + $0x40] sm:$0xff] }
  0x14   :  { %94 = vmatprep.subr.mxu0 %v57_v4  ;;  %v51_v10 = vld [vmem:[%s736_s1 + $0x38] sm:$0xff]  ;;  %v178_v13 = vld [vmem:[#allocation3 + $0xe8] sm:$0xff]  ;;  %v177_v14 = vld [vmem:[#allocation3 + $0xe0] sm:$0xff] }
  0x15   :  { %95 = vmatpush1.msra.mxu0 %v56_v5  ;;  %v180_v11 = vld [vmem:[#allocation3 + $0xf8] sm:$0xff]  ;;  %v179_v12 = vld [vmem:[#allocation3 + $0xf0] sm:$0xff]  ;;  %v49_v17 = vld [vmem:[%s736_s1 + $0x28] sm:$0xff] }
  0x16   :  { %96 = vmatprep.subr.mxu0 %v55_v6  ;;  %225 = vmatprep.subr.mxu1 %v180_v11  ;;  %v50_v15 = vld [vmem:[%s736_s1 + $0x30] sm:$0xff]  ;;  %v176_v16 = vld [vmem:[#allocation3 + $0xd8] sm:$0xff]  ;;  %v173_v22 = vld [vmem:[#allocation3 + $0xc0] sm:$0xff] }
  0x17   :  { %97 = vmatpush1.msra.mxu0 %v54_v7  ;;  %226 = vmatpush1.msra.mxu1 %v179_v12  ;;  %v175_v18 = vld [vmem:[#allocation3 + $0xd0] sm:$0xff]  ;;  %v48_v19 = vld [vmem:[%s736_s1 + $0x20] sm:$0xff]  ;;  %v174_v20 = vld [vmem:[#allocation3 + $0xc8] sm:$0xff] }
  0x18   :  { %98 = vmatprep.subr.mxu0 %v53_v8  ;;  %227 = vmatprep.subr.mxu1 %v178_v13  ;;  %v47_v21 = vld [vmem:[%s736_s1 + $0x18] sm:$0xff]  ;;  %v46_v23 = vld [vmem:[%s736_s1 + $0x10] sm:$0xff]  ;;  %v45_v25 = vld [vmem:[%s736_s1 + $0x8] sm:$0xff] }
  0x19   :  { %99 = vmatpush1.msra.mxu0 %v52_v9  ;;  %228 = vmatpush1.msra.mxu1 %v177_v14  ;;  %v172_v24 = vld [vmem:[#allocation3 + $0xb8] sm:$0xff]  ;;  %v171_v26 = vld [vmem:[#allocation3 + $0xb0] sm:$0xff]  ;;  %v170_v28 = vld [vmem:[#allocation3 + $0xa8] sm:$0xff] }
  0x1a   :  { %100 = vmatprep.subr.mxu0 %v51_v10  ;;  %229 = vmatprep.subr.mxu1 %v176_v16  ;;  %v44_v27 = vld [vmem:[%s736_s1] sm:$0xff]  ;;  %v167_v32 = vld [vmem:[#allocation3 + $0x90] sm:$0xff]  ;;  %v166_v33 = vld [vmem:[#allocation3 + $0x88] sm:$0xff] }
  0x1b   :  { %101 = vmatpush1.msra.mxu0 %v50_v15  ;;  %230 = vmatpush1.msra.mxu1 %v175_v18  ;;  %v43_v29 = vld [vmem:[%s735_s0] sm:$0x3]  ;;  %v163_v36 = vld [vmem:[#allocation3 + $0x70] sm:$0xff]  ;;  %v162_v37 = vld [vmem:[#allocation3 + $0x68] sm:$0xff] }
  0x1c   :  { %102 = vmatprep.subr.mxu0 %v49_v17  ;;  %231 = vmatprep.subr.mxu1 %v174_v20  ;;  %v169_v30 = vld [vmem:[#allocation3 + $0xa0] sm:$0xff]  ;;  %v168_v31 = vld [vmem:[#allocation3 + $0x98] sm:$0xff]  ;;  %v159_v40 = vld [vmem:[#allocation3 + $0x50] sm:$0xff] }
  0x1d   :  { %103 = vmatpush1.msra.mxu0 %v48_v19  ;;  %232 = vmatpush1.msra.mxu1 %v173_v22  ;;  %v165_v34 = vld [vmem:[#allocation3 + $0x80] sm:$0xff]  ;;  %v164_v35 = vld [vmem:[#allocation3 + $0x78] sm:$0xff]  ;;  %v158_v41 = vld [vmem:[#allocation3 + $0x48] sm:$0xff] }
  0x1e   :  { %104 = vmatprep.subr.mxu0 %v47_v21  ;;  %233 = vmatprep.subr.mxu1 %v172_v24  ;;  %v161_v38 = vld [vmem:[#allocation3 + $0x60] sm:$0xff]  ;;  %v160_v39 = vld [vmem:[#allocation3 + $0x58] sm:$0xff]  ;;  %v155_v44 = vld [vmem:[#allocation3 + $0x30] sm:$0xff] }
  0x1f   :  { %105 = vmatpush1.msra.mxu0 %v46_v23  ;;  %234 = vmatpush1.msra.mxu1 %v171_v26  ;;  %v157_v42 = vld [vmem:[#allocation3 + $0x40] sm:$0xff]  ;;  %v156_v43 = vld [vmem:[#allocation3 + $0x38] sm:$0xff]  ;;  %v154_v45 = vld [vmem:[#allocation3 + $0x28] sm:$0xff] }
  0x20   :  { %106 = vmatprep.subr.mxu0 %v45_v25  ;;  %235 = vmatprep.subr.mxu1 %v170_v28  ;;  %v153_v46 = vld [vmem:[#allocation3 + $0x20] sm:$0xff]  ;;  %v152_v47 = vld [vmem:[#allocation3 + $0x18] sm:$0xff]  ;;  %v151_v48 = vld [vmem:[#allocation3 + $0x10] sm:$0xff] }
  0x21   :  { %107 = vmatpush1.msra.mxu0 %v44_v27  ;;  %236 = vmatpush1.msra.mxu1 %v169_v30  ;;  %v150_v49 = vld [vmem:[#allocation3 + $0x8] sm:$0xff]  ;;  %v149_v50 = vld [vmem:[#allocation3] sm:$0xff]  ;;  %v212_v51 = vld [vmem:[#allocation3 + $0x1f8] sm:$0xff] }
  0x22   :  { %427 = vmatmul.mubr.msk.f32.vlgmr.msra.gmra.mxu0 %vm72_vm0, %v43_v29  ;;  %237 = vmatprep.subr.mxu1 %v168_v31  ;;  %v211_v52 = vld [vmem:[#allocation3 + $0x1f0] sm:$0xff]  ;;  %v210_v53 = vld [vmem:[#allocation3 + $0x1e8] sm:$0xff]  ;;  %v209_v54 = vld [vmem:[#allocation3 + $0x1e0] sm:$0xff]  ;;  %v62_v31 = vlaneseq }
  0x23   :  { %238 = vmatpush1.msra.mxu1 %v167_v32  ;;  %v208_v55 = vld [vmem:[#allocation3 + $0x1d8] sm:$0xff]  ;;  %v207_v56 = vld [vmem:[#allocation3 + $0x1d0] sm:$0xff]  ;;  %v206_v57 = vld [vmem:[#allocation3 + $0x1c8] sm:$0xff] }
  0x24   :  { %239 = vmatprep.subr.mxu1 %v166_v33  ;;  %v205_v58 = vld [vmem:[#allocation3 + $0x1c0] sm:$0xff]  ;;  %v204_v59 = vld [vmem:[#allocation3 + $0x1b8] sm:$0xff]  ;;  %v203_v60 = vld [vmem:[#allocation3 + $0x1b0] sm:$0xff]  ;;  %v662_v32 = vshrl.u32 %v62_v31, 7 }
  0x25   :  { %240 = vmatpush1.msra.mxu1 %v165_v34  ;;  %v202_v61 = vld [vmem:[#allocation3 + $0x1a8] sm:$0xff]  ;;  %v201_v62 = vld [vmem:[#allocation3 + $0x1a0] sm:$0xff]  ;;  %v200_v63 = vld [vmem:[#allocation3 + $0x198] sm:$0xff] }
  0x26   :  { %241 = vmatprep.subr.mxu1 %v164_v35  ;;  %v199_v0 = vld [vmem:[#allocation3 + $0x190] sm:$0xff]  ;;  %v198_v1 = vld [vmem:[#allocation3 + $0x188] sm:$0xff]  ;;  %v197_v2 = vld [vmem:[#allocation3 + $0x180] sm:$0xff]  ;;  %v64_v33 = vsub.s32 0, %v662_v32  ;;  %v68_v35 = vsub.s32 1, %v662_v32 }
  0x27   :  { %242 = vmatpush1.msra.mxu1 %v163_v36  ;;  %v196_v3 = vld [vmem:[#allocation3 + $0x178] sm:$0xff]  ;;  %v195_v4 = vld [vmem:[#allocation3 + $0x170] sm:$0xff]  ;;  %v194_v5 = vld [vmem:[#allocation3 + $0x168] sm:$0xff] }
  0x28   :  { %243 = vmatprep.subr.mxu1 %v162_v37  ;;  %v193_v6 = vld [vmem:[#allocation3 + $0x160] sm:$0xff]  ;;  %v192_v7 = vld [vmem:[#allocation3 + $0x158] sm:$0xff]  ;;  %v191_v8 = vld [vmem:[#allocation3 + $0x150] sm:$0xff] }
  0x29   :  { %244 = vmatpush1.msra.mxu1 %v161_v38  ;;  %v190_v9 = vld [vmem:[#allocation3 + $0x148] sm:$0xff]  ;;  %v189_v10 = vld [vmem:[#allocation3 + $0x140] sm:$0xff]  ;;  %v188_v11 = vld [vmem:[#allocation3 + $0x138] sm:$0xff] }
  0x2a   :  { %245 = vmatprep.subr.mxu1 %v160_v39  ;;  %v187_v12 = vld [vmem:[#allocation3 + $0x130] sm:$0xff]  ;;  %v186_v13 = vld [vmem:[#allocation3 + $0x128] sm:$0xff]  ;;  %v185_v14 = vld [vmem:[#allocation3 + $0x120] sm:$0xff] }
  0x2b   :  { %246 = vmatpush1.msra.mxu1 %v159_v40  ;;  %v184_v15 = vld [vmem:[#allocation3 + $0x118] sm:$0xff]  ;;  %v183_v16 = vld [vmem:[#allocation3 + $0x110] sm:$0xff]  ;;  %v182_v17 = vld [vmem:[#allocation3 + $0x108] sm:$0xff] }
  0x2c   :  { %247 = vmatprep.subr.mxu1 %v158_v41  ;;  %v181_v18 = vld [vmem:[#allocation3 + $0x100] sm:$0xff]  ;;  %v329_v19 = vld [vmem:[%s740_s5 + $0xf8] sm:$0xff]  ;;  %v328_v21 = vld [vmem:[%s740_s5 + $0xf0] sm:$0xff] }
  0x2d   :  { %248 = vmatpush1.msra.mxu1 %v157_v42  ;;  %v313_v20 = vld [vmem:[%s740_s5 + $0x78] sm:$0xff]  ;;  %429 = vmatprep.subr.mxu0 %v329_v19  ;;  %v312_v22 = vld [vmem:[%s740_s5 + $0x70] sm:$0xff]  ;;  %v327_v23 = vld [vmem:[%s740_s5 + $0xe8] sm:$0xff] }
  0x2e   :  { %249 = vmatprep.subr.mxu1 %v156_v43  ;;  %430 = vmatpush3.msra.mxu0 %v313_v20  ;;  %v311_v24 = vld [vmem:[%s740_s5 + $0x68] sm:$0xff]  ;;  %v326_v25 = vld [vmem:[%s740_s5 + $0xe0] sm:$0xff]  ;;  %v325_v27 = vld [vmem:[%s740_s5 + $0xd8] sm:$0xff] }
  0x2f   :  { %250 = vmatpush1.msra.mxu1 %v155_v44  ;;  %431 = vmatprep.subr.mxu0 %v328_v21  ;;  %v310_v26 = vld [vmem:[%s740_s5 + $0x60] sm:$0xff]  ;;  %v309_v28 = vld [vmem:[%s740_s5 + $0x58] sm:$0xff]  ;;  %v324_v29 = vld [vmem:[%s740_s5 + $0xd0] sm:$0xff] }
  0x30   :  { %251 = vmatprep.subr.mxu1 %v154_v45  ;;  %432 = vmatpush3.msra.mxu0 %v312_v22  ;;  %v308_v30 = vld [vmem:[%s740_s5 + $0x50] sm:$0xff]  ;;  %v60_v34 = vld [vmem:[%s737_s2] sm:$0x3]  ;;  %v323_v44 = vld [vmem:[%s740_s5 + $0xc8] sm:$0xff] }
  0x31   :  { %252 = vmatpush1.msra.mxu1 %v153_v46  ;;  %433 = vmatprep.subr.mxu0 %v327_v23  ;;  %v65_v36 = vrot.slane %v60_v34, %v64_v33  ;;  %v69_v37 = vrot.slane %v60_v34, %v68_v35  ;;  %v307_v45 = vld [vmem:[%s740_s5 + $0x48] sm:$0xff]  ;;  %v322_v46 = vld [vmem:[%s740_s5 + $0xc0] sm:$0xff] }
  0x32   :  { %253 = vmatprep.subr.mxu1 %v152_v47  ;;  %434 = vmatpush3.msra.mxu0 %v311_v24  ;;  %v306_v47 = vld [vmem:[%s740_s5 + $0x40] sm:$0xff] }
  0x33   :  { %254 = vmatpush1.msra.mxu1 %v151_v48  ;;  %435 = vmatprep.subr.mxu0 %v326_v25  ;;  %v321_v48 = vld [vmem:[%s740_s5 + $0xb8] sm:$0xff] }
  0x34   :  { %255 = vmatprep.subr.mxu1 %v150_v49  ;;  %436 = vmatpush3.msra.mxu0 %v310_v26  ;;  %v305_v49 = vld [vmem:[%s740_s5 + $0x38] sm:$0xff] }
  0x35   :  { %256 = vmatpush1.msra.mxu1 %v149_v50  ;;  %437 = vmatprep.subr.mxu0 %v325_v27  ;;  %v320_v50 = vld [vmem:[%s740_s5 + $0xb0] sm:$0xff] }
  0x36   :  { %257 = vmatprep.subr.mxu1 %v212_v51  ;;  %438 = vmatpush3.msra.mxu0 %v309_v28  ;;  %v304_v51 = vld [vmem:[%s740_s5 + $0x30] sm:$0xff] }
  0x37   :  { %258 = vmatpush2.msra.mxu1 %v211_v52  ;;  %439 = vmatprep.subr.mxu0 %v324_v29  ;;  %v319_v52 = vld [vmem:[%s740_s5 + $0xa8] sm:$0xff] }
  0x38   :  { %259 = vmatprep.subr.mxu1 %v210_v53  ;;  %440 = vmatpush3.msra.mxu0 %v308_v30  ;;  %v303_v53 = vld [vmem:[%s740_s5 + $0x28] sm:$0xff] }
  0x39   :  { %260 = vmatpush2.msra.mxu1 %v209_v54  ;;  %441 = vmatprep.subr.mxu0 %v323_v44  ;;  %v318_v54 = vld [vmem:[%s740_s5 + $0xa0] sm:$0xff] }
  0x3a   :  { %261 = vmatprep.subr.mxu1 %v208_v55  ;;  %442 = vmatpush3.msra.mxu0 %v307_v45  ;;  %v302_v55 = vld [vmem:[%s740_s5 + $0x20] sm:$0xff] }
  0x3b   :  { %262 = vmatpush2.msra.mxu1 %v207_v56  ;;  %443 = vmatprep.subr.mxu0 %v322_v46  ;;  %v317_v56 = vld [vmem:[%s740_s5 + $0x98] sm:$0xff] }
  0x3c   :  { %263 = vmatprep.subr.mxu1 %v206_v57  ;;  %444 = vmatpush3.msra.mxu0 %v306_v47  ;;  %v301_v57 = vld [vmem:[%s740_s5 + $0x18] sm:$0xff] }
  0x3d   :  { %264 = vmatpush2.msra.mxu1 %v205_v58  ;;  %445 = vmatprep.subr.mxu0 %v321_v48  ;;  %v316_v58 = vld [vmem:[%s740_s5 + $0x90] sm:$0xff] }
  0x3e   :  { %265 = vmatprep.subr.mxu1 %v204_v59  ;;  %446 = vmatpush3.msra.mxu0 %v305_v49  ;;  %v300_v59 = vld [vmem:[%s740_s5 + $0x10] sm:$0xff] }
  0x3f   :  { %266 = vmatpush2.msra.mxu1 %v203_v60  ;;  %447 = vmatprep.subr.mxu0 %v320_v50  ;;  %v315_v60 = vld [vmem:[%s740_s5 + $0x88] sm:$0xff] }
  0x40   :  { %267 = vmatprep.subr.mxu1 %v202_v61  ;;  %448 = vmatpush3.msra.mxu0 %v304_v51  ;;  %v299_v61 = vld [vmem:[%s740_s5 + $0x8] sm:$0xff] }
  0x41   :  { %268 = vmatpush2.msra.mxu1 %v201_v62  ;;  %449 = vmatprep.subr.mxu0 %v319_v52  ;;  %v314_v62 = vld [vmem:[%s740_s5 + $0x80] sm:$0xff] }
  0x42   :  { %269 = vmatprep.subr.mxu1 %v200_v63  ;;  %450 = vmatpush3.msra.mxu0 %v303_v53  ;;  %v298_v63 = vld [vmem:[%s740_s5] sm:$0xff]  ;;  %s528_s5 = smov [#allocation6]  }
  0x43   :  { %270 = vmatpush2.msra.mxu1 %v199_v0  ;;  %451 = vmatprep.subr.mxu0 %v318_v54  ;;  %v428_v0 = vld [vmem:[#allocation2] ss:$0 sm:$0xff]  ;;  %s418_s27 = sshll.u32 %s528_s5, 4  ;;  %s419_s27 = int_to_ptr.vmem [resolvable:$true] %s418_s27 }
  0x44   :  { %271 = vmatprep.subr.mxu1 %v198_v1  ;;  %452 = vmatpush3.msra.mxu0 %v302_v55  ;;  %v527_v1 = vmov 0   ;;  %p504_p6 = scmp.lt.s32.totalorder %s419_s27, %s419_s27 }
  0x45   :  { %272 = vmatpush2.msra.mxu1 %v197_v2  ;;  %453 = vmatprep.subr.mxu0 %v317_v56  ;;  %v213_v2 = vld [vmem:[%s739_s4] sm:$0x3]  ;;  %s499_s4 = scalar_lea.vmem %s419_s27, 32 }
  0x46   :  { %273 = vmatprep.subr.mxu1 %v196_v3  ;;  %454 = vmatpush3.msra.mxu0 %v301_v57  ;;  %v218_v3 = vrot.slane %v213_v2, %v64_v33  ;;  %p500_p5 = scmp.ne.s32.totalorder %s419_s27, %s499_s4  ;;  %p505_p7 = scmp.lt.s32.totalorder %s499_s4, %s499_s4 }
  0x47   :  { %274 = vmatpush2.msra.mxu1 %v195_v4  ;;  %455 = vmatprep.subr.mxu0 %v316_v58  ;;  %v222_v4 = vrot.slane %v213_v2, %v68_v35 }
  0x48   :  { %275 = vmatprep.subr.mxu1 %v194_v5  ;;  %456 = vmatpush3.msra.mxu0 %v300_v59  ;;  %p506_p8 = por %p505_p7, %p504_p6 }
  0x49   :  { %276 = vmatpush2.msra.mxu1 %v193_v6  ;;  %457 = vmatprep.subr.mxu0 %v315_v60 }
  0x4a   :  { %277 = vmatprep.subr.mxu1 %v192_v7  ;;  %458 = vmatpush3.msra.mxu0 %v299_v61  ;;  %p507_p9 = pnand %p506_p8, %p500_p5 }
  0x4b   :  { %278 = vmatpush2.msra.mxu1 %v191_v8  ;;  %459 = vmatprep.subr.mxu0 %v314_v62 }
  0x4c   :  { %279 = vmatprep.subr.mxu1 %v190_v9  ;;  %460 = vmatpush3.msra.mxu0 %v298_v63 }
  0x4d   :  { %280 = vmatpush2.msra.mxu1 %v189_v10  ;;  %470 = vset.pattern.permute.xlu0 %v527_v1 }
  0x4e   :  { %281 = vmatprep.subr.mxu1 %v188_v11  ;;  %337 = vperm.xlu0 %470, %v428_v0  }
  0x4f   :  { %282 = vmatpush2.msra.mxu1 %v187_v12 }
  0x50   :  { %283 = vmatprep.subr.mxu1 %v186_v13 }
  0x51   :  { %284 = vmatpush2.msra.mxu1 %v185_v14 }
  0x52   :  { %285 = vmatprep.subr.mxu1 %v184_v15 }
  0x53   :  { %286 = vmatpush2.msra.mxu1 %v183_v16 }
  0x54   :  { %287 = vmatprep.subr.mxu1 %v182_v17 }
  0x55   :  { %288 = vmatpush2.msra.mxu1 %v181_v18 }
  0xc9   :  { %v338_v13 = vpop.permute.xlu0 %337 }
  0xe2   :  { %v142_v38 = vpop.f32.mrf.mxu0 }
  0xe3   :  { %v143_v39 = vadd.f32 %v142_v38, %v65_v36 }
  0xe4   :  { %v144_v40 = vpop.f32.mrf.mxu0 }
  0xe5   :  { %v145_v41 = vadd.f32 %v144_v40, %v69_v37 }
  0xe7   :  { %471 = vtanh.f32 %v145_v41 }
  0xe8   :  { %473 = vtanh.f32 %v143_v39 }
  0xf4   :  { %v472_v42 = vpop.eup %471 }
  0xf5   :  { %v474_v43 = vpop.eup %473  ;;  %289 = vmatprep.mubr.f32.mxu1 %v472_v42 }
  0xf6   :  { %290 = vmatmul.mubr.f32.vlgmr.msra.gmra.mxu1 %v474_v43 }
 0x1b6   :  { %v291_v5 = vpop.f32.mrf.mxu1 }
 0x1b7   :  { %v292_v6 = vadd.f32 %v291_v5, %v218_v3 }
 0x1b8   :  { %v293_v7 = vpop.f32.mrf.mxu1 }
 0x1b9   :  { %v294_v8 = vadd.f32 %v293_v7, %v222_v4 }
 0x1bb   :  { %475 = vtanh.f32 %v294_v8 }
 0x1bc   :  { %477 = vtanh.f32 %v292_v6 }
 0x1c8   :  { %v476_v9 = vpop.eup %475 }
 0x1c9   :  { %v478_v10 = vpop.eup %477  ;;  %404 = vmatprep.mubr.f32.mxu0 %v476_v9 }
 0x1ca   :  { %405 = vmatmul.mubr.f32.vlgmr.msra.gmra.mxu0 %v478_v10 }
 0x28a   :  { %v461_v11 = vpop.f32.mrf.mxu0 }
 0x28c   :  { %v462_v12 = vpop.f32.mrf.mxu0 }
 0x28d   :  { %v463_v14 = vadd.f32 %v462_v12, %v461_v11 }
 0x28f   :  { %v407_v15 = vadd.f32 %v463_v14, %v338_v13 }
 0x291   :  { %411 = vst.msk [vmem:[#allocation6] sm:$0x3] %vm410_vm1, %v407_v15 }
 0x292   :  { %510 = shalt.err (!%p507_p9)
}
 0x293   :  { %421 = dma.vmem_to_hbm [thread:$0]  %s419_s27, 32, %s742_s7, [#allocation5]  }
 0x294   :  { %521 = dma.done.wait [#allocation5], 32  }
 0x295   :  { %522 = vsyncadd [#allocation5], 4294967264 }
 0x296   :  { %425 = vsyncpa [#allocation4], 1 }
 0x297   :  { %426 = vsyncpa [#allocation5], 1 }

</bundles_post_ra>
